<compile_context>
chip_gen: v7x
topology: tpu7x:2x2x1
jax: 0.10.0
libtpu: 0.0.40
codegen_flags: <defaults>
</compile_context>

<pallas_src>
import jax
import jax.numpy as jnp
from jax.experimental import pallas as pl
from jax.experimental.pallas import tpu as pltpu


def _mlp_kernel(x_ref, w1_ref, b1_ref, w2_ref, b2_ref, w3_ref, b3_ref, o_ref):
    # Whole forward pass fused in VMEM, feature-major:
    #   X: (2, tb) -> H1: (16, tb) -> H2: (16, tb) -> Y: (1, tb)
    x = x_ref[...]                                                       # (2, tb)
    h1 = jnp.dot(w1_ref[...], x, preferred_element_type=jnp.float32) + b1_ref[...]
    h1 = jnp.maximum(h1, 0.0)                                            # (16, tb)
    h2 = jnp.dot(w2_ref[...], h1, preferred_element_type=jnp.float32) + b2_ref[...]
    h2 = jnp.maximum(h2, 0.0)                                            # (16, tb)
    y = jnp.dot(w3_ref[...], h2, preferred_element_type=jnp.float32) + b3_ref[...]
    o_ref[...] = y.astype(o_ref.dtype)                                   # (1, tb) lane-dense


def circle_model_v2(x, params, *, tb=512):
    """x: (N, 2) float32. params: dict of PyTorch-convention weights/biases.

    tb: batch tile (multiple of 128). Sweep 512-2048 per TPU generation for
    large N; 512 already saturates HBM on v5e.
    """
    N, F = x.shape
    assert F == 2
    assert tb % 128 == 0, "batch tile must be a multiple of the 128-lane width"

    # Feature-major view of the input: batch on the lane axis.
    xT = x.T                                       # (2, N)
    n_pad = (-N) % tb
    if n_pad:
        xT = jnp.pad(xT, ((0, 0), (0, n_pad)))
    Np = N + n_pad

    # Weights stay in PyTorch (out, in) layout; biases become (out, 1) columns
    # that broadcast over the lane (batch) axis.
    w1 = params["w1"]                              # (16, 2)
    w2 = params["w2"]                              # (16, 16)
    w3 = params["w3"]                              # (1, 16)
    b1 = params["b1"].reshape(-1, 1)               # (16, 1)
    b2 = params["b2"].reshape(-1, 1)               # (16, 1)
    b3 = params["b3"].reshape(-1, 1)               # (1, 1)

    grid = (Np // tb,)

    def const(shape):
        # Tiny constant parameter block; same block every grid step
        # (constant index_map => Pallas does not re-DMA it per step).
        return pl.BlockSpec(shape, lambda i: (0, 0))

    out = pl.pallas_call(
        _mlp_kernel,
        out_shape=jax.ShapeDtypeStruct((1, Np), jnp.float32),
        grid_spec=pltpu.PrefetchScalarGridSpec(
            num_scalar_prefetch=0,
            grid=grid,
            in_specs=[
                pl.BlockSpec((2, tb), lambda i: (0, i)),   # streaming x tile
                const(w1.shape), const(b1.shape),
                const(w2.shape), const(b2.shape),
                const(w3.shape), const(b3.shape),
            ],
            out_specs=pl.BlockSpec((1, tb), lambda i: (0, i)),  # lane-dense row
        ),
        compiler_params=pltpu.CompilerParams(
            dimension_semantics=("parallel",),      # shard batch steps across TCs (v7x)
            vmem_limit_bytes=32 * 1024 * 1024,      # explicit budget; fits v5e/v6e/v7x
        ),
    )(xT, w1, b1, w2, b2, w3, b3)

    # (1, Np) -> drop padding -> (N, 1) to match the PyTorch module's output.
    return out[:, :N].reshape(N, 1)


def init_params(key):
    """Deterministic init matching nn.Linear shapes (out_features, in_features)."""
    ks = jax.random.split(key, 6)

    def u(k, shape, fan_in):
        bound = 1.0 / jnp.sqrt(fan_in)
        return jax.random.uniform(k, shape, jnp.float32, -bound, bound)

    return {
        "w1": u(ks[0], (16, 2), 2.0),   "b1": u(ks[1], (16,), 2.0),
        "w2": u(ks[2], (16, 16), 16.0), "b2": u(ks[3], (16,), 16.0),
        "w3": u(ks[4], (1, 16), 16.0),  "b3": u(ks[5], (1,), 16.0),
    }


def reference(x, p):
    h1 = jnp.maximum(x @ p["w1"].T + p["b1"], 0.0)
    h2 = jnp.maximum(h1 @ p["w2"].T + p["b2"], 0.0)
    return h2 @ p["w3"].T + p["b3"]


if __name__ == "__main__":
    key = jax.random.PRNGKey(0)
    kx, kp = jax.random.split(key)
    params = init_params(kp)

    # Multi-step grid (2 parallel steps at tb=512) — exercises pipelining and
    # megacore sharding while staying small.
    N = 1024
    x = jax.random.normal(kx, (N, 2), jnp.float32)
    out = jax.block_until_ready(circle_model_v2(x, params, tb=512))
    ref = reference(x, params)
    assert out.shape == (N, 1)
    assert jnp.allclose(out, ref, atol=1e-5, rtol=1e-5), "mismatch vs JAX reference (multi-step)"

    # Ragged batch — exercises the padding path.
    N2 = 200
    x2 = jax.random.normal(kx, (N2, 2), jnp.float32)
    out2 = jax.block_until_ready(circle_model_v2(x2, params, tb=512))
    ref2 = reference(x2, params)
    assert out2.shape == (N2, 1)
    assert jnp.allclose(out2, ref2, atol=1e-5, rtol=1e-5), "mismatch vs JAX reference (padded)"

    print("KERNEL_OK")
</pallas_src>

<mosaic_0001>
module attributes {stable_mosaic.version = 11 : i64} {
  func.func @_mlp_kernel(%arg0: i32, %arg1: memref<2x512xf32, #tpu.memory_space<vmem>>, %arg2: memref<16x2xf32, #tpu.memory_space<vmem>>, %arg3: memref<16x1xf32, #tpu.memory_space<vmem>>, %arg4: memref<16x16xf32, #tpu.memory_space<vmem>>, %arg5: memref<16x1xf32, #tpu.memory_space<vmem>>, %arg6: memref<1x16xf32, #tpu.memory_space<vmem>>, %arg7: memref<1x1xf32, #tpu.memory_space<vmem>>, %arg8: memref<1x512xf32, #tpu.memory_space<vmem>>) attributes {dimension_semantics = [#tpu.dimension_semantics<parallel>], iteration_bounds = array<i64: 2>, scalar_prefetch = 0 : i64, scratch_operands = 0 : i64, tpu.core_type = #tpu.core_type<tc>, window_params = [{transform_indices = @transform_0, window_bounds = array<i64: 2, 512>}, {pipeline_mode = #tpu.pipeline_mode<synchronous>, transform_indices = @transform_1, window_bounds = array<i64: 16, 2>}, {pipeline_mode = #tpu.pipeline_mode<synchronous>, transform_indices = @transform_2, window_bounds = array<i64: 16, 1>}, {pipeline_mode = #tpu.pipeline_mode<synchronous>, transform_indices = @transform_3, window_bounds = array<i64: 16, 16>}, {pipeline_mode = #tpu.pipeline_mode<synchronous>, transform_indices = @transform_4, window_bounds = array<i64: 16, 1>}, {pipeline_mode = #tpu.pipeline_mode<synchronous>, transform_indices = @transform_5, window_bounds = array<i64: 1, 16>}, {pipeline_mode = #tpu.pipeline_mode<synchronous>, transform_indices = @transform_6, window_bounds = array<i64: 1, 1>}, {transform_indices = @transform_7, window_bounds = array<i64: 1, 512>}]} {
    %c0 = arith.constant 0 : index
    %c0_0 = arith.constant 0 : index
    %0 = vector.load %arg1[%c0, %c0_0] : memref<2x512xf32, #tpu.memory_space<vmem>>, vector<2x512xf32>
    %c0_1 = arith.constant 0 : index
    %c0_2 = arith.constant 0 : index
    %1 = vector.load %arg2[%c0_1, %c0_2] : memref<16x2xf32, #tpu.memory_space<vmem>>, vector<16x2xf32>
    %cst = arith.constant dense<0.000000e+00> : vector<16x512xf32>
    %2 = tpu.matmul %1, %0, %cst {dimension_numbers = #tpu.dot_dimension_numbers<[1], [0], [0], [1], [0, 0, 1, 1], [], []>} : vector<16x2xf32>, vector<2x512xf32>, vector<16x512xf32> -> vector<16x512xf32>
    %c0_3 = arith.constant 0 : index
    %c0_4 = arith.constant 0 : index
    %3 = vector.load %arg3[%c0_3, %c0_4] : memref<16x1xf32, #tpu.memory_space<vmem>>, vector<16x1xf32>
    %4 = vector.broadcast %3 : vector<16x1xf32> to vector<16x512xf32>
    %5 = arith.addf %2, %4 : vector<16x512xf32>
    %cst_5 = arith.constant 0.000000e+00 : f32
    %6 = vector.broadcast %cst_5 : f32 to vector<16x512xf32>
    %7 = arith.maximumf %5, %6 : vector<16x512xf32>
    %c0_6 = arith.constant 0 : index
    %c0_7 = arith.constant 0 : index
    %8 = vector.load %arg4[%c0_6, %c0_7] : memref<16x16xf32, #tpu.memory_space<vmem>>, vector<16x16xf32>
    %cst_8 = arith.constant dense<0.000000e+00> : vector<16x512xf32>
    %9 = tpu.matmul %8, %7, %cst_8 {dimension_numbers = #tpu.dot_dimension_numbers<[1], [0], [0], [1], [0, 0, 1, 1], [], []>} : vector<16x16xf32>, vector<16x512xf32>, vector<16x512xf32> -> vector<16x512xf32>
    %c0_9 = arith.constant 0 : index
    %c0_10 = arith.constant 0 : index
    %10 = vector.load %arg5[%c0_9, %c0_10] : memref<16x1xf32, #tpu.memory_space<vmem>>, vector<16x1xf32>
    %11 = vector.broadcast %10 : vector<16x1xf32> to vector<16x512xf32>
    %12 = arith.addf %9, %11 : vector<16x512xf32>
    %cst_11 = arith.constant 0.000000e+00 : f32
    %13 = vector.broadcast %cst_11 : f32 to vector<16x512xf32>
    %14 = arith.maximumf %12, %13 : vector<16x512xf32>
    %c0_12 = arith.constant 0 : index
    %c0_13 = arith.constant 0 : index
    %15 = vector.load %arg6[%c0_12, %c0_13] : memref<1x16xf32, #tpu.memory_space<vmem>>, vector<1x16xf32>
    %cst_14 = arith.constant dense<0.000000e+00> : vector<1x512xf32>
    %16 = tpu.matmul %15, %14, %cst_14 {dimension_numbers = #tpu.dot_dimension_numbers<[1], [0], [0], [1], [0, 0, 1, 1], [], []>} : vector<1x16xf32>, vector<16x512xf32>, vector<1x512xf32> -> vector<1x512xf32>
    %c0_15 = arith.constant 0 : index
    %c0_16 = arith.constant 0 : index
    %17 = vector.load %arg7[%c0_15, %c0_16] : memref<1x1xf32, #tpu.memory_space<vmem>>, vector<1x1xf32>
    %18 = vector.broadcast %17 : vector<1x1xf32> to vector<1x512xf32>
    %19 = arith.addf %16, %18 : vector<1x512xf32>
    %c0_17 = arith.constant 0 : index
    %c0_18 = arith.constant 0 : index
    %20 = vector.load %arg8[%c0_17, %c0_18] : memref<1x512xf32, #tpu.memory_space<vmem>>, vector<1x512xf32>
    tpu.vector_store %arg8[%c0_17, %c0_18], %19 {strides = array<i32>} : memref<1x512xf32, #tpu.memory_space<vmem>>, vector<1x512xf32>,
    return
  }
  func.func @transform_0(%arg0: i32) -> (i32, i32) {
    %c0_i32 = arith.constant 0 : i32
    %c0_i32_0 = arith.constant 0 : i32
    return %c0_i32, %arg0 : i32, i32
  }
  func.func @transform_1(%arg0: i32) -> (i32, i32) {
    %c0_i32 = arith.constant 0 : i32
    %c0_i32_0 = arith.constant 0 : i32
    %c0_i32_1 = arith.constant 0 : i32
    return %c0_i32, %c0_i32_0 : i32, i32
  }
  func.func @transform_2(%arg0: i32) -> (i32, i32) {
    %c0_i32 = arith.constant 0 : i32
    %c0_i32_0 = arith.constant 0 : i32
    %c0_i32_1 = arith.constant 0 : i32
    return %c0_i32, %c0_i32_0 : i32, i32
  }
  func.func @transform_3(%arg0: i32) -> (i32, i32) {
    %c0_i32 = arith.constant 0 : i32
    %c0_i32_0 = arith.constant 0 : i32
    %c0_i32_1 = arith.constant 0 : i32
    return %c0_i32, %c0_i32_0 : i32, i32
  }
  func.func @transform_4(%arg0: i32) -> (i32, i32) {
    %c0_i32 = arith.constant 0 : i32
    %c0_i32_0 = arith.constant 0 : i32
    %c0_i32_1 = arith.constant 0 : i32
    return %c0_i32, %c0_i32_0 : i32, i32
  }
  func.func @transform_5(%arg0: i32) -> (i32, i32) {
    %c0_i32 = arith.constant 0 : i32
    %c0_i32_0 = arith.constant 0 : i32
    %c0_i32_1 = arith.constant 0 : i32
    return %c0_i32, %c0_i32_0 : i32, i32
  }
  func.func @transform_6(%arg0: i32) -> (i32, i32) {
    %c0_i32 = arith.constant 0 : i32
    %c0_i32_0 = arith.constant 0 : i32
    %c0_i32_1 = arith.constant 0 : i32
    return %c0_i32, %c0_i32_0 : i32, i32
  }
  func.func @transform_7(%arg0: i32) -> (i32, i32) {
    %c0_i32 = arith.constant 0 : i32
    %c0_i32_0 = arith.constant 0 : i32
    return %c0_i32, %arg0 : i32, i32
  }
}

</mosaic_0001>

<bundles_post_ra>
// kernel: tpu_custom_call.1
= control target key start
LH: loop header
LB: loop body
LE: loop exit
PB: predicated region body
PF: predicated region fallthrough
CT: control target
= control target key end

     0   :  { %s1290_s0 = inlined_call_operand.vmem [shape: f32[2,1024], index: 0, kind: input, shape index: {}]   ;;  %s1291_s1 = inlined_call_operand.vmem [shape: f32[16,2], index: 1, kind: input, shape index: {}]   ;;  %s1292_s2 = inlined_call_operand.vmem [shape: f32[16,1], index: 2, kind: input, shape index: {}]   ;;  %s1293_s3 = inlined_call_operand.vmem [shape: f32[16,16], index: 3, kind: input, shape index: {}]   ;;  %s1294_s4 = inlined_call_operand.vmem [shape: f32[16,1], index: 4, kind: input, shape index: {}]   ;;  %s1295_s5 = inlined_call_operand.vmem [shape: f32[1,16], index: 5, kind: input, shape index: {}]   ;;  %s1296_s6 = inlined_call_operand.<no memory space> [shape: f32[1,1], index: 6, kind: input, shape index: {}]   ;;  %s1297_s7 = inlined_call_operand.hbm [shape: f32[1,1024], index: 7, kind: output, shape index: {}]  }
   0x1   :  { %v12_v0 = vstv %s1296_s6 }
   0x2   :  { %13 = vst [vmem:[#allocation2] sm:$0x1] %v12_v0 }
   0x3   :  { %14 = vsyncpa [#allocation4], 0 }
   0x4   :  { %16 = vsyncpa [#allocation4 + $0x1], 0  ;;  %s1141_s26 = smov 0   ;;  %s1143_s27 = smov 0  }
   0x5   :  { %s1145_s28 = smov 0   ;;  %s1147_s29 = smov 0  }
   0x6 LB: > { %s1162_s6 = sadd.s32 4294967295, %s1091_s29   ;;  %s940_s30 = sadd.s32 4294967294, %s1091_s29   ;;  %s1091_s29 = sphi %s1147_s29, %s1303_s29   ;;  %s1087_s28 = sphi %s1145_s28, %s1302_s28   ;;  %s1083_s27 = sphi %s1143_s27, %s1301_s27   ;;  %s1079_s26 = sphi %s1141_s26, %s1300_s26  }
   0x7   : > { %s1166_s8 = sadd.s32 1, %s1091_s29   ;;  %s181_s9 = sadd.s32 1, %s1087_s28 }
   0x8   : > { %s178_s10 = ssub.s32 %s1091_s29, %s1166_s8  ;;  %p191_p0 = scmp.ne.s32.totalorder %s1087_s28, %s1083_s27 }
   0x9   : > { %p179_p1 = scmp.eq.s32.totalorder %s178_s10, 0  ;;  %p192_p2 = scmp.eq.s32.totalorder %s1162_s6, 1 }
   0xa   : > { %p197_p3 = scmp.ne.s32.totalorder %s1083_s27, %s1079_s26  ;;  %p198_p4 = scmp.eq.s32.totalorder %s940_s30, 1 }
   0xb   : > { %s1177_s11 = scalar_select %p179_p1, %s1087_s28, %s181_s9  }
   0xc   : > { %p1179_p5 = por %p192_p2, %p191_p0  ;;  %p1183_p6 = por %p198_p4, %p197_p3 }
   0xd   : > { %p943_p7 = scmp.ge.s32.totalorder %s1091_s29, 1  ;;  %p243_p8 = scmp.lt.s32.totalorder %s1091_s29, 3 }
   0xf   : > { %p244_p9 = pnand %p943_p7, %p243_p8 }
  0x10   : > { %s945_s14 = sshll.u32 (!%p244_p9), %s1162_s6, 2  ;;  %v302_v1 = vlaneseq (!%p244_p9)  ;;  %v1093_v2 = vmov (!%p244_p9), 1983009808   ;;  %v1094_v4 = vmov (!%p244_p9), 0.0   ;;  %v285_v5 = vld [vmem:[%s1292_s2] sm:$0xff] (!%p244_p9)  ;;  %v1095_v7 = vmov (!%p244_p9), 0  }
  0x11   : > { %247 = sbr.rel (%p244_p9) target bundleno = 727 (0x2d7), region = 48  ;;  %p276_p10 = scmp.lt.s32.totalorder (!%p244_p9), %s945_s14, 7  ;;  %v300_v3 = vunpack.c.l.s4 (!%p244_p9), %v1093_v2  ;;  %395 = vmatprep.mubr.f32.mxu0 (!%p244_p9), %v1094_v4  ;;  %472 = vmatprep.mubr.f32.mxu1 (!%p244_p9), %v1094_v4  ;;  %v286_v9 = vld [vmem:[%s1292_s2 + $0x8] sm:$0xff] (!%p244_p9)  ;;  %v677_v14 = vld [vmem:[#allocation2] sm:$0x1] (!%p244_p9)  ;;  %vm322_vm0 = vcmask (!%p244_p9), 1041408  }
  0x12   : > { %v1196_v6 = vshrl.u32 (!%p244_p9), %v302_v1, 7  ;;  %1026 = vset.pattern.permute.xlu0 (!%p244_p9), %v1095_v7  ;;  %1027 = vset.pattern.permute.xlu1 (!%p244_p9), %v1095_v7  ;;  %v283_v17 = vld [vmem:[%s1291_s1] sm:$0xff] (!%p244_p9)  ;;  %vm315_vm1 = vcmask (!%p244_p9), 15360   ;;  %v284_v19 = vld [vmem:[%s1291_s1 + $0x8] sm:$0xff] (!%p244_p9)  ;;  %vm507_vm2 = vcmask (!%p244_p9), 130048   ;;  %s966_s24 = sshll.u32 (!%p244_p9), %s1162_s6, 6 }
  0x13   : > { %v301_v8 = vunpack.c.0.s8 (!%p244_p9), %v300_v3  ;;  %289 = vperm.xlu0 (!%p244_p9), %1026, %v285_v5   ;;  %v495_v20 = vld [vmem:[%s1294_s4] sm:$0xff] (!%p244_p9)  ;;  %v496_v21 = vld [vmem:[%s1294_s4 + $0x8] sm:$0xff] (!%p244_p9)  ;;  %vm863_vm3 = vcmp.lt.s32.totalorder (!%p244_p9), %v302_v1, 512  ;;  %s1097_s6 = smov (!%p244_p9), [#allocation3]  }
  0x14   : > { %499 = vperm.xlu1 (!%p244_p9), %1027, %v495_v20   ;;  %v493_v52 = vld [vmem:[%s1293_s3] sm:$0xff] (!%p244_p9)  ;;  %v494_v53 = vld [vmem:[%s1293_s3 + $0x8] sm:$0xff] (!%p244_p9)  ;;  %s1033_s17 = sshll.u32 (!%p244_p9), %s1097_s6, 4  ;;  %s1034_s17 = int_to_ptr.vmem [resolvable:$false] %s1033_s17 }
  0x15   : > { %v304_v10 = vsub.s32 (!%p244_p9), %v301_v8, %v1196_v6  ;;  %s1035_s18 = scalar_lea.vmem (!%p244_p9), %s1034_s17, 128 }
  0x17   : > { %294 = vperm.xlu0 (!%p244_p9), %1026, %v286_v9  }
  0x18   : > { %s1305_s14 = smov (!%p276_p10, %s945_s14), 7  ;;  %504 = vperm.xlu1 %1027, %v496_v21  }
  0x19   : > { %s946_s19 = sshll.u32 %s1305_s14, 1  ;;  %s1248_s14 = scalar_lea.hbm %s1297_s7, %s966_s24 }
  0x1a   : > { %s279_s22 = scalar_lea.vmem %s1290_s0, %s946_s19 }
  0x1b   : > { %v282_v11 = vld [vmem:[%s279_s22] sm:$0xff]  ;;  %680 = vperm.xlu0 %1026, %v677_v14   ;;  %s272_s22 = sand.u32 1, %s1083_s27  }
  0x1c   : > { %v305_v12 = vrot.slane %v282_v11, %v304_v10  ;;  %v298_v13 = vcombine.high %v282_v11, %v282_v11  ;;  %s944_s23 = sshll.u32 %s272_s22, 2  ;;  %s867_s15 = scalar_lea.sflag [#allocation4], %s272_s22 }
  0x1d   : > { %s274_s25 = scalar_lea.vmem [#allocation3], %s944_s23 }
  0x1e   : > { %v313_v15 = vcombine.high %v305_v12, %v305_v12  ;;  %v312_v16 = vrot.slane %v298_v13, %v304_v10  ;;  %s881_s30 = sshll.u32 %s274_s25, 4  ;;  %s1250_s30 = int_to_ptr.vmem [resolvable:$true] %s881_s30 }
  0x1f   : > { %s1029_s16 = scalar_lea.vmem %s1250_s30, 64  ;;  %p1036_p0 = scmp.lt.s32.totalorder %s1250_s30, %s1034_s17 }
  0x20   : > { %947 = vmatprep.subr.msk.mxu0 %vm322_vm0, %v313_v15  ;;  %v314_v18 = vcombine.high %v312_v16, %v312_v16  ;;  %p1030_p11 = scmp.ne.s32.totalorder %s1250_s30, %s1029_s16  ;;  %p1037_p1 = scmp.lt.s32.totalorder %s1035_s18, %s1029_s16 }
  0x21   : > { %948 = vmatpush1.msk.msra.mxu0 %vm322_vm0, %v305_v12 }
  0x22   : > { %949 = vmatmul.mubr.msk.f32.vlgmr.msra.gmra.mrb[0].mxu0 %vm315_vm1, %v283_v17  ;;  %951 = vmatprep.subr.msk.mxu1 %vm322_vm0, %v314_v18  ;;  %p1031_p12 = pnand %p1030_p11, %p1179_p5  ;;  %p1038_p2 = por %p1037_p1, %p1036_p0 }
  0x23   : > { %952 = vmatpush1.msk.msra.mxu1 %vm322_vm0, %v312_v16  ;;  %401 = vmatprep.mubr.f32.mxu0 %v1094_v4 }
  0x24   : > { %953 = vmatmul.mubr.msk.f32.vlgmr.msra.gmra.mrb[0].mxu1 %vm315_vm1, %v283_v17  ;;  %p1032_p13 = pneg %p1031_p12 }
  0x25   : > { %478 = vmatprep.mubr.f32.mxu1 %v1094_v4 }
  0x26   : > { %950 = vmatmul.mubr.msk.f32.gmra.mrb[2].mxu0 %vm315_vm1, %v284_v19  ;;  %p1039_p3 = pnand %p1038_p2, %p1032_p13 }
  0x27   : > { %578 = vmatprep.mubr.f32.mxu0 %v1094_v4 }
  0x28   : > { %954 = vmatmul.mubr.msk.f32.gmra.mrb[2].mxu1 %vm315_vm1, %v284_v19 }
  0x29   : > { %655 = vmatprep.mubr.f32.mxu1 %v1094_v4 }
  0x92   : > { %v290_v22 = vpop.permute.xlu0 %289 }
  0x93   : > { %v500_v54 = vpop.permute.xlu1 %499 }
  0x96   : > { %v295_v28 = vpop.permute.xlu0 %294 }
  0x97   : > { %v505_v58 = vpop.permute.xlu1 %504 }
  0xf5   : > { %v397_v23 = vpop.f32.mrb[0].mxu0 }
  0xf6   : > { %v399_v24 = vpop.f32.mrb[1].mxu0  ;;  %v398_v26 = vadd.f32 %v397_v23, %v290_v22  ;;  %v685_v23 = vsub.s32 0, %v1196_v6 }
  0xf7   : > { %v474_v25 = vpop.f32.mrb[0].mxu1  ;;  %v400_v29 = vadd.f32 %v399_v24, %v290_v22  ;;  %v681_v24 = vpop.permute.xlu0 %680 }
  0xf8   : > { %v476_v27 = vpop.f32.mrb[1].mxu1  ;;  %v475_v31 = vadd.f32 %v474_v25, %v290_v22  ;;  %v485_v37 = vmax.f32 %v398_v26, 0.0  ;;  %v1096_v25 = vmov 1966171168  }
  0xf9   : > { %v403_v30 = vpop.f32.mrb[2].mxu0  ;;  %v477_v34 = vadd.f32 %v476_v27, %v290_v22  ;;  %v486_v41 = vmax.f32 %v400_v29, 0.0  ;;  %v676_v22 = vld [vmem:[%s1295_s5] sm:$0x1]  ;;  %v839_v26 = vunpack.c.l.s4 %v1096_v25  ;;  %v686_v27 = vrot.slane %v681_v24, %v685_v23 }
  0xfa   : > { %v404_v32 = vadd.f32 %v403_v30, %v295_v28  ;;  %v405_v33 = vpop.f32.mrb[3].mxu0  ;;  %v487_v44 = vmax.f32 %v475_v31, 0.0 }
  0xfb   : > { %v406_v35 = vadd.f32 %v405_v33, %v295_v28  ;;  %v480_v36 = vpop.f32.mrb[2].mxu1  ;;  %v488_v47 = vmax.f32 %v477_v34, 0.0  ;;  %v840_v29 = vunpack.c.0.s8 %v839_v26 }
  0xfc   : > { %v489_v38 = vmax.f32 %v404_v32, 0.0  ;;  %v481_v39 = vadd.f32 %v480_v36, %v295_v28  ;;  %v482_v40 = vpop.f32.mrb[3].mxu1 }
  0xfd   : > { %v490_v42 = vmax.f32 %v406_v35, 0.0  ;;  %v483_v43 = vadd.f32 %v482_v40, %v295_v28 }
  0xfe   : > { %v969_v45 = vpack.c.bf16 %v489_v38, %v485_v37  ;;  %v491_v46 = vmax.f32 %v481_v39, 0.0  ;;  %v843_v37 = vsub.s32 %v840_v29, %v1196_v6 }
  0xff   : > { %v967_v48 = vpack.c.bf16 %v490_v42, %v486_v41  ;;  %v492_v49 = vmax.f32 %v483_v43, 0.0 }
 0x100   : > { %v973_v50 = vpack.c.bf16 %v491_v46, %v487_v44 }
 0x101   : > { %v971_v51 = vpack.c.bf16 %v492_v49, %v488_v47  ;;  %968 = vmatprep.subr.bf16.mxu0 %v967_v48 }
 0x102   : > { %970 = vmatpush1.bf16.msra.mxu0 %v969_v45 }
 0x103   : > { %972 = vmatprep.subr.bf16.mxu1 %v971_v51 }
 0x104   : > { %974 = vmatpush1.bf16.msra.mxu1 %v973_v50 }
 0x105   : > { %955 = vmatmul.mubr.msk.f32.vlgmr.msra.gmra.mrb[4].mxu0 %vm507_vm2, %v493_v52 }
 0x106   : > { %584 = vmatprep.mubr.f32.mxu0 %v1094_v4 }
 0x107   : > { %957 = vmatmul.mubr.msk.f32.vlgmr.msra.gmra.mrb[4].mxu1 %vm507_vm2, %v493_v52 }
 0x108   : > { %661 = vmatprep.mubr.f32.mxu1 %v1094_v4 }
 0x109   : > { %956 = vmatmul.mubr.msk.f32.gmra.mrb[6].mxu0 %vm507_vm2, %v494_v53 }
 0x10a   : > { %754 = vmatprep.mubr.f32.mxu0 %v1094_v4 }
 0x10b   : > { %958 = vmatmul.mubr.msk.f32.gmra.mrb[6].mxu1 %vm507_vm2, %v494_v53 }
 0x10c   : > { %825 = vmatprep.mubr.f32.mxu1 %v1094_v4 }
 0x1d8   : > { %v580_v55 = vpop.f32.mrb[4].mxu0 }
 0x1d9   : > { %v582_v56 = vpop.f32.mrb[5].mxu0  ;;  %v581_v59 = vadd.f32 %v580_v55, %v500_v54 }
 0x1da   : > { %v657_v57 = vpop.f32.mrb[4].mxu1  ;;  %v583_v61 = vadd.f32 %v582_v56, %v500_v54 }
 0x1db   : > { %v659_v60 = vpop.f32.mrb[5].mxu1  ;;  %v658_v63 = vadd.f32 %v657_v57, %v500_v54  ;;  %v668_v8 = vmax.f32 %v581_v59, 0.0 }
 0x1dc   : > { %v586_v62 = vpop.f32.mrb[6].mxu0  ;;  %v660_v3 = vadd.f32 %v659_v60, %v500_v54  ;;  %v669_v4 = vmax.f32 %v583_v61, 0.0 }
 0x1dd   : > { %v587_v0 = vadd.f32 %v586_v62, %v505_v58  ;;  %v588_v2 = vpop.f32.mrb[7].mxu0  ;;  %v670_v14 = vmax.f32 %v658_v63, 0.0 }
 0x1de   : > { %v589_v5 = vadd.f32 %v588_v2, %v505_v58  ;;  %v663_v7 = vpop.f32.mrb[6].mxu1  ;;  %v671_v17 = vmax.f32 %v660_v3, 0.0 }
 0x1df   : > { %v672_v9 = vmax.f32 %v587_v0, 0.0  ;;  %v664_v10 = vadd.f32 %v663_v7, %v505_v58  ;;  %v665_v11 = vpop.f32.mrb[7].mxu1 }
 0x1e0   : > { %v673_v12 = vmax.f32 %v589_v5, 0.0  ;;  %v666_v13 = vadd.f32 %v665_v11, %v505_v58 }
 0x1e1   : > { %v977_v15 = vpack.c.bf16 %v672_v9, %v668_v8  ;;  %v674_v16 = vmax.f32 %v664_v10, 0.0 }
 0x1e2   : > { %v975_v18 = vpack.c.bf16 %v673_v12, %v669_v4  ;;  %v675_v19 = vmax.f32 %v666_v13, 0.0 }
 0x1e3   : > { %v981_v20 = vpack.c.bf16 %v674_v16, %v670_v14 }
 0x1e4   : > { %v979_v21 = vpack.c.bf16 %v675_v19, %v671_v17  ;;  %976 = vmatprep.subr.bf16.mxu0 %v975_v18 }
 0x1e5   : > { %978 = vmatpush1.bf16.msra.mxu0 %v977_v15 }
 0x1e6   : > { %980 = vmatprep.subr.bf16.mxu1 %v979_v21 }
 0x1e7   : > { %982 = vmatpush1.bf16.msra.mxu1 %v981_v20 }
 0x1e8   : > { %959 = vmatmul.mubr.msk.f32.vlgmr.msra.gmra.mrb[8].mxu0 %vm507_vm2, %v676_v22 }
 0x1ea   : > { %960 = vmatmul.mubr.msk.f32.vlgmr.msra.gmra.mrb[8].mxu1 %vm507_vm2, %v676_v22 }
 0x2bb   : > { %v756_v28 = vpop.f32.mrb[8].mxu0 }
 0x2bc   : > { %v757_v30 = vadd.f32 %v756_v28, %v686_v27  ;;  %v758_v31 = vpop.f32.mrb[9].mxu0 }
 0x2bd   : > { %v759_v32 = vadd.f32 %v758_v31, %v686_v27  ;;  %v827_v33 = vpop.f32.mrb[8].mxu1 }
 0x2be   : > { %v828_v34 = vadd.f32 %v827_v33, %v686_v27  ;;  %v829_v35 = vpop.f32.mrb[9].mxu1 }
 0x2bf   : > { %v836_v36 = vcombine.low %v757_v30, %v759_v32  ;;  %v830_v38 = vadd.f32 %v829_v35, %v686_v27 }
 0x2c1   : > { %v837_v39 = vcombine.low %v828_v34, %v830_v38  ;;  %v844_v40 = vrot.slane %v836_v36, %v843_v37 }
 0x2c3   : > { %v851_v41 = vrot.slane %v837_v39, %v843_v37 }
 0x2c5   : > { %v852_v42 = vcombine.low %v844_v40, %v851_v41 }
 0x2c7   : > { %v859_v43 = vrot.slane %v852_v42, %v843_v37 }
 0x2c9   : > { %865 = vst.msk [vmem:[%s274_s25] sm:$0xf] %vm863_vm3, %v859_v43 }
 0x2ca   : > { %1042 = shalt.err (!%p1039_p3)
}
 0x2cb   : > { %s1043_s19 = scalar_lea.hbm %s1248_s14, 64  ;;  %s1047_s22 = scalar_lea.hbm %s1297_s7, 128 }
 0x2cc   : > { %p1044_p4 = scmp.ne.s32.totalorder %s1248_s14, %s1043_s19  ;;  %p1048_p9 = scmp.lt.u32.totalorder %s1248_s14, %s1297_s7 }
 0x2cd   : > { %p1049_p10 = scmp.lt.u32.totalorder %s1047_s22, %s1043_s19  ;;  %p1051_p12 = scmp.lt.u32.totalorder %s1043_s19, %s1248_s14 }
 0x2ce   : > { %p1045_p7 = pnand %p1044_p4, %p1179_p5 }
 0x2cf   : > { %p1050_p11 = por %p1049_p10, %p1048_p9 }
 0x2d0   : > { %p1046_p8 = pneg %p1045_p7 }
 0x2d1   : > { %p1052_p13 = por %p1051_p12, %p1050_p11 }
 0x2d3   : > { %p1053_p0 = pnand %p1052_p13, %p1046_p8 }
 0x2d5   : > { %1056 = shalt.err (!%p1053_p0)
}
 0x2d6   : > { %983 = dma.vmem_to_hbm [thread:$0]  (%p1179_p5), %s1250_s30, 64, %s1248_s14, %s867_s15  }
 0x2d7 PF: > { %p989_p1 = scmp.ge.s32.totalorder %s1091_s29, 2  ;;  %s893_s25 = sand.u32 1, %s1079_s26  }
 0x2d8   : > { %s894_s9 = scalar_lea.sflag [#allocation4], %s893_s25 }
 0x2d9   : > { %p986_p2 = pnand %p989_p1, %p1183_p6 }
 0x2db   : > { %1074 = dma.done.wait (!%p986_p2), %s894_s9, 64  }
 0x2dc   : > { %1076 = vsyncadd (!%p986_p2), %s894_s9, 4294967232  ;;  %p19_p3 = scmp.ge.s32.totalorder %s1166_s8, 4   ;;  %s1300_s26 = smov %s1083_s27 }
 0x2dd   : > { %s1301_s27 = smov %s1087_s28  ;;  %s1302_s28 = smov %s1177_s11 }
 0x2de   : > { %s1303_s29 = smov %s1166_s8  ;;  %21 = sbr.rel (!%p19_p3) target bundleno = 6 (0x6), region = 83 }
 0x2e5   :  { %899 = vsyncpa [#allocation4], 1 }
 0x2e6   :  { %901 = vsyncpa [#allocation4 + $0x1], 1 }

</bundles_post_ra>
